<compile_context>
chip_gen: v7x
topology: tpu7x:2x2x1
jax: 0.10.0
libtpu: 0.0.40
codegen_flags: <defaults>
</compile_context>

<pallas_src>
import functools

import jax
import jax.numpy as jnp
from jax import lax
from jax.experimental import pallas as pl
from jax.experimental.pallas import tpu as pltpu


# ----------------------------------------------------------------------------
# Kernel
# ----------------------------------------------------------------------------
def _make_attention_kernel(tq, heads, dim_head, cache_kv):
    """Build the fused attention kernel body.

    Refs (per grid step (b, qt)):
      x_ref   : (1, N, D)      full sequence for batch b (resident across qt)
      wq_ref  : (D, H*dh)      Q projection (softmax scale pre-folded), resident
      wk_ref  : (D, H*dh)      K projection, resident
      wv_ref  : (D, H*dh)      V projection, resident
      wo_ref  : (H*dh, D)      output projection, resident
      b_ref   : (1, D) f32     output bias, resident
      o_ref   : (1, tq, D)     output tile
      k_cache : (N, H*dh)      VMEM scratch (K for all heads of batch b)
      v_cache : (N, H*dh)      VMEM scratch (V for all heads of batch b)
    """

    def kernel(x_ref, wq_ref, wk_ref, wv_ref, wo_ref, b_ref, o_ref,
               k_cache, v_cache):
        qt = pl.program_id(1)
        cdt = x_ref.dtype  # compute dtype for MXU operands (bf16 stays bf16)

        def project_kv():
            # One lane-dense GEMM each for K and V over the whole sequence.
            x_full = x_ref[0]                                    # (N, D)
            k_cache[...] = jnp.dot(
                x_full, wk_ref[...],
                preferred_element_type=jnp.float32).astype(cdt)
            v_cache[...] = jnp.dot(
                x_full, wv_ref[...],
                preferred_element_type=jnp.float32).astype(cdt)

        if cache_kv:
            # qt axis is sequential ("arbitrary"): recompute only when the
            # batch changes (qt == 0).
            pl.when(qt == 0)(project_kv)
        else:
            # B == 1 path: qt axis may be sharded across TensorCores, so the
            # qt == 0 trick is unsafe; recompute per step instead.
            project_kv()

        # Query rows for this tile, sliced from the resident sequence block.
        row0 = pl.multiple_of(qt * tq, tq)
        x_q = x_ref[0, pl.ds(row0, tq), :]                       # (tq, D)

        # Q projection for this tile only; scale already folded into wq.
        q = jnp.dot(x_q, wq_ref[...],
                    preferred_element_type=jnp.float32).astype(cdt)  # (tq, H*dh)

        head_outs = []
        for h in range(heads):                                   # static unroll
            lo = h * dim_head
            hi = lo + dim_head
            q_h = q[:, lo:hi]                                    # (tq, dh)
            k_h = k_cache[:, lo:hi]                              # (N,  dh)
            v_h = v_cache[:, lo:hi]                              # (N,  dh)

            # Scores (tq, N), f32 (v5e has no bf16 VPU/EUP).
            scores = lax.dot_general(q_h, k_h, (((1,), (1,)), ((), ())),
                                     preferred_element_type=jnp.float32)

            # Numerically-stable softmax with DEFERRED normalization.
            m = jnp.max(scores, axis=-1, keepdims=True)
            e = jnp.exp(scores - m)                              # (tq, N) f32
            l = jnp.sum(e, axis=-1, keepdims=True)               # (tq, 1) f32
            o_h = jnp.dot(e.astype(cdt), v_h,
                          preferred_element_type=jnp.float32)    # (tq, dh) f32
            head_outs.append(o_h * pl.reciprocal(l, approx=True))

        # 'b h n d -> b n (h d)': concatenate heads, then ONE lane-dense
        # output projection (tq, H*dh) @ (H*dh, D) + bias.
        out_heads = jnp.concatenate(head_outs, axis=-1).astype(cdt)
        y = jnp.dot(out_heads, wo_ref[...],
                    preferred_element_type=jnp.float32) + b_ref[...]
        o_ref[0] = y.astype(o_ref.dtype)

    return kernel


# ----------------------------------------------------------------------------
# Host-side parameter preparation (one-time, outside the hot path)
# ----------------------------------------------------------------------------
def prepare_attention_params(w_qkv, w_out, b_out, *, heads, dim_head,
                             dtype=None):
    """Re-layout PyTorch-style Linear weights for the kernel.

    w_qkv: (3*H*dh, D)  -> wq, wk, wv each (D, H*dh), scale folded into wq
    w_out: (D, H*dh)    -> wo (H*dh, D)
    b_out: (D,)         -> (1, D) float32 (added to the f32 accumulator)

    `dtype` should be the activation dtype (bf16 activations with f32 weights
    would silently promote the matmuls to the slow f32 MXU path).
    """
    inner = heads * dim_head
    D = w_qkv.shape[1]
    assert w_qkv.shape == (3 * inner, D)
    assert w_out.shape == (D, inner)
    scale = dim_head ** (-0.5)

    wq, wk, wv = jnp.split(w_qkv, 3, axis=0)       # each (inner, D)
    wq = wq.T * scale                              # (D, inner), scale folded
    wk = wk.T
    wv = wv.T
    wo = w_out.T                                   # (inner, D)
    bias = b_out.reshape(1, D).astype(jnp.float32)

    if dtype is not None:
        wq, wk, wv, wo = (t.astype(dtype) for t in (wq, wk, wv, wo))
    return wq, wk, wv, wo, bias


# ----------------------------------------------------------------------------
# Tiling / VMEM heuristics (generation-aware)
# ----------------------------------------------------------------------------
def _vmem_capacity_bytes():
    try:
        return int(pltpu.get_tpu_info().vmem_capacity_bytes)
    except Exception:
        return 64 * 1024 * 1024  # conservative fallback (v7x per-TC VMEM)


def _estimate_vmem_bytes(tq, N, D, inner, itemsize):
    x_blk = 2 * N * D * itemsize              # double-buffered sequence block
    o_blk = 2 * tq * D * itemsize             # double-buffered output tile
    kv = 2 * N * inner * itemsize             # K/V VMEM caches (single-buffer)
    wts = (4 * D * inner) * itemsize + D * 4  # resident weights + bias
    live = 3 * tq * N * 4 + 4 * tq * inner * 4  # f32 score/exp + q/out_heads
    return x_blk + o_blk + kv + wts + live


def _pick_q_tile(N, B, D, inner, itemsize, budget):
    cands = sorted({t for t in (N, 1024, 512, 256, 128) if N % t == 0},
                   reverse=True)
    tq = cands[-1]
    for t in cands:
        if _estimate_vmem_bytes(t, N, D, inner, itemsize) <= budget:
            tq = t
            break
    # v7x has 2 TensorCores: with B == 1 make the (parallel) query-tile axis
    # have extent >= 2 so both cores get work.
    if B == 1 and tq == N and N >= 16 and (N // 2) % 8 == 0:
        tq = N // 2
    return tq


# ----------------------------------------------------------------------------
# Wrapper
# ----------------------------------------------------------------------------
@functools.partial(jax.jit, static_argnames=("heads", "dim_head"))
def attention_pallas(x, params, *, heads, dim_head):
    """x: (B, N, D); params: output of prepare_attention_params."""
    wq, wk, wv, wo, bias = params
    B, N, D = x.shape
    inner = heads * dim_head
    assert wq.shape == (D, inner) and wo.shape == (inner, D)

    # Enforce matching MXU operand dtypes (avoid silent f32 promotion).
    if wq.dtype != x.dtype:
        wq, wk, wv, wo = (t.astype(x.dtype) for t in (wq, wk, wv, wo))

    itemsize = jnp.dtype(x.dtype).itemsize
    vmem_cap = _vmem_capacity_bytes()
    budget = int(vmem_cap * 0.6)
    tq = _pick_q_tile(N, B, D, inner, itemsize, budget)
    n_qt = N // tq
    est = _estimate_vmem_bytes(tq, N, D, inner, itemsize)
    vmem_limit = int(min(vmem_cap * 3 // 4,
                         max(32 * 1024 * 1024, int(est * 1.5))))

    # B > 1 : batch axis is parallel, qt axis sequential -> K/V cached per batch.
    # B == 1: both axes parallel (v7x dual TensorCore), K/V recomputed per step.
    cache_kv = B > 1
    dim_sems = ("parallel", "arbitrary") if cache_kv else ("parallel", "parallel")

    kernel = _make_attention_kernel(tq, heads, dim_head, cache_kv)

    return pl.pallas_call(
        kernel,
        out_shape=jax.ShapeDtypeStruct((B, N, D), x.dtype),
        grid_spec=pltpu.PrefetchScalarGridSpec(
            num_scalar_prefetch=0,
            grid=(B, n_qt),
            in_specs=[
                # full sequence for batch b (resident across query tiles)
                pl.BlockSpec((1, N, D), lambda b, qt: (b, 0, 0)),
                # projection weights: constant index maps -> fetched once,
                # VMEM-resident for the whole kernel
                pl.BlockSpec((D, inner), lambda b, qt: (0, 0)),
                pl.BlockSpec((D, inner), lambda b, qt: (0, 0)),
                pl.BlockSpec((D, inner), lambda b, qt: (0, 0)),
                pl.BlockSpec((inner, D), lambda b, qt: (0, 0)),
                pl.BlockSpec((1, D), lambda b, qt: (0, 0)),
            ],
            out_specs=pl.BlockSpec((1, tq, D), lambda b, qt: (b, qt, 0)),
            scratch_shapes=[
                pltpu.VMEM((N, inner), x.dtype),   # K cache (all heads)
                pltpu.VMEM((N, inner), x.dtype),   # V cache (all heads)
            ],
        ),
        compiler_params=pltpu.CompilerParams(
            dimension_semantics=dim_sems,
            vmem_limit_bytes=vmem_limit),
    )(x, wq, wk, wv, wo, bias)


# ----------------------------------------------------------------------------
# Pure-JAX reference (mirrors the PyTorch forward exactly)
# ----------------------------------------------------------------------------
def attention_reference(x, w_qkv, w_out, b_out, *, heads, dim_head):
    B, N, D = x.shape
    inner = heads * dim_head
    scale = dim_head ** (-0.5)
    qkv = x @ w_qkv.T                                      # (B, N, 3*inner)
    q, k, v = jnp.split(qkv, 3, axis=-1)

    def to_heads(t):  # 'b n (h d) -> b h n d'
        return t.reshape(B, N, heads, dim_head).transpose(0, 2, 1, 3)

    q, k, v = map(to_heads, (q, k, v))
    dots = jnp.einsum('bhnd,bhmd->bhnm', q, k) * scale
    attn = jax.nn.softmax(dots, axis=-1)
    out = jnp.einsum('bhnm,bhmd->bhnd', attn, v)
    out = out.transpose(0, 2, 1, 3).reshape(B, N, inner)   # 'b h n d -> b n (h d)'
    return out @ w_out.T + b_out


if __name__ == "__main__":
    # Small, module-consistent shapes.
    B, N, D = 2, 8, 32          # batch, seq, dim
    heads, dim_head = 2, 16     # inner_dim = 32
    inner = heads * dim_head

    key = jax.random.PRNGKey(0)
    k1, k2, k3, k4 = jax.random.split(key, 4)

    x = jax.random.normal(k1, (B, N, D), dtype=jnp.float32)
    # Deterministic parameter init (PyTorch Linear-style uniform bounds).
    bound_qkv = 1.0 / (D ** 0.5)
    w_qkv = jax.random.uniform(k2, (3 * inner, D), jnp.float32,
                               -bound_qkv, bound_qkv)
    bound_out = 1.0 / (inner ** 0.5)
    w_out = jax.random.uniform(k3, (D, inner), jnp.float32,
                               -bound_out, bound_out)
    b_out = jax.random.uniform(k4, (D,), jnp.float32, -bound_out, bound_out)

    # One-time weight re-layout (outside the hot path), cast to activation dtype.
    params = prepare_attention_params(w_qkv, w_out, b_out,
                                      heads=heads, dim_head=dim_head,
                                      dtype=x.dtype)

    y = attention_pallas(x, params, heads=heads, dim_head=dim_head)
    y = jax.block_until_ready(y)

    y_ref = attention_reference(x, w_qkv, w_out, b_out,
                                heads=heads, dim_head=dim_head)
    # Tolerance loosened slightly for pl.reciprocal(approx=True) in softmax.
    assert jnp.allclose(y, y_ref, atol=1e-2, rtol=1e-2), "mismatch vs reference"

    print("KERNEL_OK")
</pallas_src>

<mosaic_0001>
module attributes {stable_mosaic.version = 11 : i64} {
  func.func @kernel(%arg0: i32, %arg1: i32, %arg2: memref<1x8x32xf32, #tpu.memory_space<vmem>>, %arg3: memref<32x32xf32, #tpu.memory_space<vmem>>, %arg4: memref<32x32xf32, #tpu.memory_space<vmem>>, %arg5: memref<32x32xf32, #tpu.memory_space<vmem>>, %arg6: memref<32x32xf32, #tpu.memory_space<vmem>>, %arg7: memref<1x32xf32, #tpu.memory_space<vmem>>, %arg8: memref<1x8x32xf32, #tpu.memory_space<vmem>>, %arg9: memref<8x32xf32, #tpu.memory_space<vmem>>, %arg10: memref<8x32xf32, #tpu.memory_space<vmem>>) attributes {dimension_semantics = [#tpu.dimension_semantics<parallel>, #tpu.dimension_semantics<arbitrary>], iteration_bounds = array<i64: 2, 1>, scalar_prefetch = 0 : i64, scratch_operands = 2 : i64, tpu.core_type = #tpu.core_type<tc>, window_params = [{transform_indices = @transform_0, window_bounds = array<i64: 1, 8, 32>}, {pipeline_mode = #tpu.pipeline_mode<synchronous>, transform_indices = @transform_1, window_bounds = array<i64: 32, 32>}, {pipeline_mode = #tpu.pipeline_mode<synchronous>, transform_indices = @transform_2, window_bounds = array<i64: 32, 32>}, {pipeline_mode = #tpu.pipeline_mode<synchronous>, transform_indices = @transform_3, window_bounds = array<i64: 32, 32>}, {pipeline_mode = #tpu.pipeline_mode<synchronous>, transform_indices = @transform_4, window_bounds = array<i64: 32, 32>}, {pipeline_mode = #tpu.pipeline_mode<synchronous>, transform_indices = @transform_5, window_bounds = array<i64: 1, 32>}, {transform_indices = @transform_6, window_bounds = array<i64: 1, 8, 32>}]} {
    %c0_i32 = arith.constant 0 : i32
    %0 = arith.cmpi eq, %arg1, %c0_i32 : i32
    %1 = arith.extui %0 : i1 to i32
    %c0_i32_0 = arith.constant 0 : i32
    %2 = arith.cmpi ne, %1, %c0_i32_0 : i32
    scf.if %2 {
      %c0_27 = arith.constant 0 : index
      %c0_28 = arith.constant 0 : index
      %c0_29 = arith.constant 0 : index
      %49 = vector.load %arg2[%c0_27, %c0_28, %c0_29] : memref<1x8x32xf32, #tpu.memory_space<vmem>>, vector<1x8x32xf32>
      %50 = vector.shape_cast %49 : vector<1x8x32xf32> to vector<8x32xf32>
      %c0_30 = arith.constant 0 : index
      %c0_31 = arith.constant 0 : index
      %51 = vector.load %arg4[%c0_30, %c0_31] : memref<32x32xf32, #tpu.memory_space<vmem>>, vector<32x32xf32>
      %cst_32 = arith.constant dense<0.000000e+00> : vector<8x32xf32>
      %52 = tpu.matmul %50, %51, %cst_32 {dimension_numbers = #tpu.dot_dimension_numbers<[1], [0], [0], [1], [0, 0, 1, 1], [], []>} : vector<8x32xf32>, vector<32x32xf32>, vector<8x32xf32> -> vector<8x32xf32>
      %c0_33 = arith.constant 0 : index
      %c0_34 = arith.constant 0 : index
      %53 = vector.load %arg9[%c0_33, %c0_34] : memref<8x32xf32, #tpu.memory_space<vmem>>, vector<8x32xf32>
      tpu.vector_store %arg9[%c0_33, %c0_34], %52 {strides = array<i32>} : memref<8x32xf32, #tpu.memory_space<vmem>>, vector<8x32xf32>,
      %c0_35 = arith.constant 0 : index
      %c0_36 = arith.constant 0 : index
      %54 = vector.load %arg5[%c0_35, %c0_36] : memref<32x32xf32, #tpu.memory_space<vmem>>, vector<32x32xf32>
      %cst_37 = arith.constant dense<0.000000e+00> : vector<8x32xf32>
      %55 = tpu.matmul %50, %54, %cst_37 {dimension_numbers = #tpu.dot_dimension_numbers<[1], [0], [0], [1], [0, 0, 1, 1], [], []>} : vector<8x32xf32>, vector<32x32xf32>, vector<8x32xf32> -> vector<8x32xf32>
      %c0_38 = arith.constant 0 : index
      %c0_39 = arith.constant 0 : index
      %56 = vector.load %arg10[%c0_38, %c0_39] : memref<8x32xf32, #tpu.memory_space<vmem>>, vector<8x32xf32>
      tpu.vector_store %arg10[%c0_38, %c0_39], %55 {strides = array<i32>} : memref<8x32xf32, #tpu.memory_space<vmem>>, vector<8x32xf32>,
    } else {
    }
    %c8_i32 = arith.constant 8 : i32
    %3 = arith.muli %arg1, %c8_i32 : i32
    %4 = tpu.assume_multiple %3, 8 : i32
    %c0 = arith.constant 0 : index
    %5 = arith.index_cast %4 : i32 to index
    %c0_1 = arith.constant 0 : index
    %6 = vector.load %arg2[%c0, %5, %c0_1] : memref<1x8x32xf32, #tpu.memory_space<vmem>>, vector<1x8x32xf32>
    %7 = vector.shape_cast %6 : vector<1x8x32xf32> to vector<8x32xf32>
    %c0_2 = arith.constant 0 : index
    %c0_3 = arith.constant 0 : index
    %8 = vector.load %arg3[%c0_2, %c0_3] : memref<32x32xf32, #tpu.memory_space<vmem>>, vector<32x32xf32>
    %cst = arith.constant dense<0.000000e+00> : vector<8x32xf32>
    %9 = tpu.matmul %7, %8, %cst {dimension_numbers = #tpu.dot_dimension_numbers<[1], [0], [0], [1], [0, 0, 1, 1], [], []>} : vector<8x32xf32>, vector<32x32xf32>, vector<8x32xf32> -> vector<8x32xf32>
    %10 = vector.extract_strided_slice %9 {offsets = [0, 0], sizes = [8, 16], strides = [1, 1]} : vector<8x32xf32> to vector<8x16xf32>
    %c0_4 = arith.constant 0 : index
    %c0_5 = arith.constant 0 : index
    %11 = vector.load %arg9[%c0_4, %c0_5] : memref<8x32xf32, #tpu.memory_space<vmem>>, vector<8x16xf32>
    %c0_6 = arith.constant 0 : index
    %c0_7 = arith.constant 0 : index
    %12 = vector.load %arg10[%c0_6, %c0_7] : memref<8x32xf32, #tpu.memory_space<vmem>>, vector<8x16xf32>
    %cst_8 = arith.constant dense<0.000000e+00> : vector<8x8xf32>
    %13 = tpu.matmul %10, %11, %cst_8 {dimension_numbers = #tpu.dot_dimension_numbers<[1], [1], [0], [0], [0, 0, 1, 0], [], []>} : vector<8x16xf32>, vector<8x16xf32>, vector<8x8xf32> -> vector<8x8xf32>
    %cst_9 = arith.constant dense<0xFF800000> : vector<8xf32>
    %14 = vector.multi_reduction <maximumf>, %13, %cst_9 [1] : vector<8x8xf32> to vector<8xf32>
    %15 = vector.shape_cast %14 : vector<8xf32> to vector<8x1xf32>
    %16 = vector.broadcast %15 : vector<8x1xf32> to vector<8x8xf32>
    %17 = arith.subf %13, %16 : vector<8x8xf32>
    %18 = math.exp %17 : vector<8x8xf32>
    %cst_10 = arith.constant dense<0.000000e+00> : vector<8xf32>
    %19 = vector.multi_reduction <add>, %18, %cst_10 [1] : vector<8x8xf32> to vector<8xf32>
    %20 = vector.shape_cast %19 : vector<8xf32> to vector<8x1xf32>
    %cst_11 = arith.constant dense<0.000000e+00> : vector<8x16xf32>
    %21 = tpu.matmul %18, %12, %cst_11 {dimension_numbers = #tpu.dot_dimension_numbers<[1], [0], [0], [1], [0, 0, 1, 1], [], []>} : vector<8x8xf32>, vector<8x16xf32>, vector<8x16xf32> -> vector<8x16xf32>
    %22 = tpu.reciprocal %20 {approx = true} : vector<8x1xf32> -> vector<8x1xf32>
    %23 = vector.broadcast %22 : vector<8x1xf32> to vector<8x16xf32>
    %24 = arith.mulf %21, %23 : vector<8x16xf32>
    %25 = vector.extract_strided_slice %9 {offsets = [0, 16], sizes = [8, 16], strides = [1, 1]} : vector<8x32xf32> to vector<8x16xf32>
    %c0_12 = arith.constant 0 : index
    %c16 = arith.constant 16 : index
    %26 = vector.load %arg9[%c0_12, %c16] : memref<8x32xf32, #tpu.memory_space<vmem>>, vector<8x16xf32>
    %c0_13 = arith.constant 0 : index
    %c16_14 = arith.constant 16 : index
    %27 = vector.load %arg10[%c0_13, %c16_14] : memref<8x32xf32, #tpu.memory_space<vmem>>, vector<8x16xf32>
    %cst_15 = arith.constant dense<0.000000e+00> : vector<8x8xf32>
    %28 = tpu.matmul %25, %26, %cst_15 {dimension_numbers = #tpu.dot_dimension_numbers<[1], [1], [0], [0], [0, 0, 1, 0], [], []>} : vector<8x16xf32>, vector<8x16xf32>, vector<8x8xf32> -> vector<8x8xf32>
    %cst_16 = arith.constant dense<0xFF800000> : vector<8xf32>
    %29 = vector.multi_reduction <maximumf>, %28, %cst_16 [1] : vector<8x8xf32> to vector<8xf32>
    %30 = vector.shape_cast %29 : vector<8xf32> to vector<8x1xf32>
    %31 = vector.broadcast %30 : vector<8x1xf32> to vector<8x8xf32>
    %32 = arith.subf %28, %31 : vector<8x8xf32>
    %33 = math.exp %32 : vector<8x8xf32>
    %cst_17 = arith.constant dense<0.000000e+00> : vector<8xf32>
    %34 = vector.multi_reduction <add>, %33, %cst_17 [1] : vector<8x8xf32> to vector<8xf32>
    %35 = vector.shape_cast %34 : vector<8xf32> to vector<8x1xf32>
    %cst_18 = arith.constant dense<0.000000e+00> : vector<8x16xf32>
    %36 = tpu.matmul %33, %27, %cst_18 {dimension_numbers = #tpu.dot_dimension_numbers<[1], [0], [0], [1], [0, 0, 1, 1], [], []>} : vector<8x8xf32>, vector<8x16xf32>, vector<8x16xf32> -> vector<8x16xf32>
    %37 = tpu.reciprocal %35 {approx = true} : vector<8x1xf32> -> vector<8x1xf32>
    %38 = vector.broadcast %37 : vector<8x1xf32> to vector<8x16xf32>
    %39 = arith.mulf %36, %38 : vector<8x16xf32>
    %40 = tpu.concatenate %24, %39 in 1 : vector<8x16xf32>, vector<8x16xf32> -> vector<8x32xf32>
    %c0_19 = arith.constant 0 : index
    %c0_20 = arith.constant 0 : index
    %41 = vector.load %arg6[%c0_19, %c0_20] : memref<32x32xf32, #tpu.memory_space<vmem>>, vector<32x32xf32>
    %cst_21 = arith.constant dense<0.000000e+00> : vector<8x32xf32>
    %42 = tpu.matmul %40, %41, %cst_21 {dimension_numbers = #tpu.dot_dimension_numbers<[1], [0], [0], [1], [0, 0, 1, 1], [], []>} : vector<8x32xf32>, vector<32x32xf32>, vector<8x32xf32> -> vector<8x32xf32>
    %c0_22 = arith.constant 0 : index
    %c0_23 = arith.constant 0 : index
    %43 = vector.load %arg7[%c0_22, %c0_23] : memref<1x32xf32, #tpu.memory_space<vmem>>, vector<1x32xf32>
    %44 = vector.broadcast %43 : vector<1x32xf32> to vector<8x32xf32>
    %45 = arith.addf %42, %44 : vector<8x32xf32>
    %c0_24 = arith.constant 0 : index
    %c0_25 = arith.constant 0 : index
    %c0_26 = arith.constant 0 : index
    %46 = vector.load %arg8[%c0_24, %c0_25, %c0_26] : memref<1x8x32xf32, #tpu.memory_space<vmem>>, vector<1x8x32xf32>
    %47 = vector.shape_cast %46 : vector<1x8x32xf32> to vector<8x32xf32>
    %48 = vector.shape_cast %45 : vector<8x32xf32> to vector<1x8x32xf32>
    tpu.vector_store %arg8[%c0_24, %c0_25, %c0_26], %48 {strides = array<i32>} : memref<1x8x32xf32, #tpu.memory_space<vmem>>, vector<1x8x32xf32>,
    return
  }
  func.func @transform_0(%arg0: i32, %arg1: i32) -> (i32, i32, i32) {
    %c0_i32 = arith.constant 0 : i32
    %c0_i32_0 = arith.constant 0 : i32
    %c0_i32_1 = arith.constant 0 : i32
    return %arg0, %c0_i32, %c0_i32_0 : i32, i32, i32
  }
  func.func @transform_1(%arg0: i32, %arg1: i32) -> (i32, i32) {
    %c0_i32 = arith.constant 0 : i32
    %c0_i32_0 = arith.constant 0 : i32
    %c0_i32_1 = arith.constant 0 : i32
    return %c0_i32, %c0_i32_0 : i32, i32
  }
  func.func @transform_2(%arg0: i32, %arg1: i32) -> (i32, i32) {
    %c0_i32 = arith.constant 0 : i32
    %c0_i32_0 = arith.constant 0 : i32
    %c0_i32_1 = arith.constant 0 : i32
    return %c0_i32, %c0_i32_0 : i32, i32
  }
  func.func @transform_3(%arg0: i32, %arg1: i32) -> (i32, i32) {
    %c0_i32 = arith.constant 0 : i32
    %c0_i32_0 = arith.constant 0 : i32
    %c0_i32_1 = arith.constant 0 : i32
    return %c0_i32, %c0_i32_0 : i32, i32
  }
  func.func @transform_4(%arg0: i32, %arg1: i32) -> (i32, i32) {
    %c0_i32 = arith.constant 0 : i32
    %c0_i32_0 = arith.constant 0 : i32
    %c0_i32_1 = arith.constant 0 : i32
    return %c0_i32, %c0_i32_0 : i32, i32
  }
  func.func @transform_5(%arg0: i32, %arg1: i32) -> (i32, i32) {
    %c0_i32 = arith.constant 0 : i32
    %c0_i32_0 = arith.constant 0 : i32
    %c0_i32_1 = arith.constant 0 : i32
    return %c0_i32, %c0_i32_0 : i32, i32
  }
  func.func @transform_6(%arg0: i32, %arg1: i32) -> (i32, i32, i32) {
    %c0_i32 = arith.constant 0 : i32
    %c0_i32_0 = arith.constant 0 : i32
    return %arg0, %arg1, %c0_i32 : i32, i32, i32
  }
}

</mosaic_0001>

<bundles_post_ra>
// kernel: attention_pallas.1
= control target key start
LH: loop header
LB: loop body
LE: loop exit
PB: predicated region body
PF: predicated region fallthrough
CT: control target
= control target key end

     0   :  { %s2041_s0 = inlined_call_operand.hbm [shape: f32[2,8,32], index: 0, kind: input, shape index: {}]   ;;  %s2042_s1 = inlined_call_operand.hbm [shape: f32[32,32], index: 1, kind: input, shape index: {}]   ;;  %s2043_s2 = inlined_call_operand.hbm [shape: f32[32,32], index: 2, kind: input, shape index: {}]   ;;  %s2044_s3 = inlined_call_operand.hbm [shape: f32[32,32], index: 3, kind: input, shape index: {}]   ;;  %s2045_s4 = inlined_call_operand.hbm [shape: f32[32,32], index: 4, kind: input, shape index: {}]   ;;  %s2046_s5 = inlined_call_operand.vmem [shape: f32[1,32], index: 5, kind: input, shape index: {}]   ;;  %s2047_s6 = inlined_call_operand.hbm [shape: f32[2,8,32], index: 6, kind: output, shape index: {}]  }
   0x1   :  { %2053 = sst [smem:[#allocation18_spill]] %s2042_s1 }
   0x2   :  { %11 = vsyncpa [#allocation5], 0 }
   0x3   :  { %13 = vsyncpa [#allocation5 + $0x1], 0 }
   0x4   :  { %14 = vsyncpa [#allocation8], 0 }
   0x5   :  { %15 = vsyncpa [#allocation11], 0 }
   0x6   :  { %16 = vsyncpa [#allocation6], 0 }
   0x7   :  { %18 = vsyncpa [#allocation6 + $0x1], 0  ;;  %s1681_s21 = smov 0   ;;  %s1683_s22 = smov 0  }
   0x8   :  { %s1685_s23 = smov 0   ;;  %s1687_s24 = smov 0  }
   0x9   :  { %s1689_s25 = smov 0   ;;  %s1691_s26 = smov 0  }
   0xa LB: > { %s2048_s27 = sadd.s32 4294967295, %s1631_s26   ;;  %p1135_p0 = scmp.ge.s32.totalorder %s1631_s26, 1  ;;  %s1631_s26 = sphi %s1691_s26, %s24_s26   ;;  %s1627_s25 = sphi %s1689_s25, %s2075_s25   ;;  %s1623_s24 = sphi %s1687_s24, %s2074_s24   ;;  %s1619_s23 = sphi %s1685_s23, %s2073_s23   ;;  %s1615_s22 = sphi %s1683_s22, %s2072_s22   ;;  %s1611_s21 = sphi %s1681_s21, %s2071_s21  }
   0xb   : > { %p1715_p1 = scmp.eq.s32.totalorder %s2048_s27, 0  ;;  %p200_p2 = scmp.lt.s32.totalorder %s1631_s26, 3 }
   0xc   : > { %s1633_s30 = smov [#allocation7]   ;;  %s1634_s9 = smov [#allocation10]  }
   0xd   : > { %s2054_s28 = scalar_select %p1715_p1, 1, 0 }
   0xe   : > { %p1720_p3 = pnand %p1135_p0, %p200_p2  ;;  %s212_s7 = sshll.u32 %s1633_s30, 4  ;;  %s1724_s7 = int_to_ptr.vmem [resolvable:$true] %s212_s7 }
   0xf   : > { %s238_s10 = sshll.u32 %s1634_s9, 4  ;;  %s1635_s11 = smov [#allocation9]   ;;  %s1735_s10 = int_to_ptr.vmem [resolvable:$true] %s238_s10 }
  0x10   : > { %s2055_s29 = scalar_select %p1720_p3, 1, 0 }
  0x11   : > { %p1301_p4 = pneg %p1720_p3  ;;  %s1737_s12 = sshll.u32 %s1635_s11, 4  ;;  %s226_s12 = int_to_ptr.vmem [resolvable:$true] %s1737_s12 }
  0x12   : > { %s2057_s1 = sld [smem:[#allocation18_spill]] }
  0x13   : > { %p1731_p6 = pnand %p1301_p4, %p1715_p1 }
  0x15   : > { %p1747_p8 = pneg %p1731_p6 }
  0x18   : > { %s1399_s15 = scalar_lea.hbm %s2057_s1, 512 }
  0x19   : > { %p1400_p7 = scmp.ne.s32.totalorder %s2057_s1, %s1399_s15  ;;  %p1406_p11 = scmp.lt.u32.totalorder %s1399_s15, %s2057_s1 }
  0x1b   : > { %p1402_p9 = pnand %p1747_p8, %p1400_p7 }
  0x1d   : > { %p1403_p10 = pneg %p1402_p9 }
  0x1f   : > { %p1408_p12 = pnand %p1406_p11, %p1403_p10 }
  0x21   : > { %1411 = shalt.err (!%p1408_p12)
}
  0x22   : > { %s1412_s30 = scalar_lea.vmem %s1724_s7, 512  ;;  %p1420_p4 = scmp.lt.s32.totalorder %s1724_s7, %s1724_s7 }
  0x23   : > { %p1413_p13 = scmp.ne.s32.totalorder %s1724_s7, %s1412_s30  ;;  %p1421_p5 = scmp.lt.s32.totalorder %s1412_s30, %s1412_s30 }
  0x25   : > { %p1415_p0 = pnand %p1413_p13, %p1747_p8  ;;  %p1422_p7 = por %p1421_p5, %p1420_p4 }
  0x27   : > { %p1416_p2 = pneg %p1415_p0 }
  0x29   : > { %p1423_p9 = pnand %p1422_p7, %p1416_p2 }
  0x2b   : > { %1426 = shalt.err (!%p1423_p9)
}
  0x2c   : > { %s1636_s9 = smov 128   ;;  %s1637_s11 = smov 8  }
  0x2d   : > { %1304 = dma.hbm_to_vmem [thread:$0]  (!%p1731_p6), %s2057_s1, 512, %s1724_s7, [#allocation8], %s1636_s9, %s1636_s9, %s1637_s11  }
  0x2e   : > { %s1427_s17 = scalar_lea.hbm %s2044_s3, 512 }
  0x2f   : > { %p1428_p5 = scmp.ne.s32.totalorder %s2044_s3, %s1427_s17  ;;  %p1434_p12 = scmp.lt.u32.totalorder %s1427_s17, %s2044_s3 }
  0x31   : > { %p1430_p10 = pnand %p1428_p5, %p1747_p8 }
  0x33   : > { %p1431_p11 = pneg %p1430_p10 }
  0x35   : > { %p1436_p13 = pnand %p1434_p12, %p1431_p11 }
  0x37   : > { %1439 = shalt.err (!%p1436_p13)
}
  0x38   : > { %s1440_s7 = scalar_lea.vmem %s1735_s10, 512  ;;  %p1448_p7 = scmp.lt.s32.totalorder %s1735_s10, %s1735_s10 }
  0x39   : > { %p1441_p0 = scmp.ne.s32.totalorder %s1735_s10, %s1440_s7  ;;  %p1449_p9 = scmp.lt.s32.totalorder %s1440_s7, %s1440_s7 }
  0x3b   : > { %p1443_p2 = pnand %p1441_p0, %p1747_p8  ;;  %p1450_p5 = por %p1449_p9, %p1448_p7 }
  0x3d   : > { %p1444_p4 = pneg %p1443_p2 }
  0x3f   : > { %p1451_p10 = pnand %p1450_p5, %p1444_p4 }
  0x41   : > { %1454 = shalt.err (!%p1451_p10)
}
  0x42   : > { %1310 = dma.hbm_to_vmem [thread:$0]  (!%p1731_p6), %s2044_s3, 512, %s1735_s10, [#allocation11], %s1636_s9, %s1636_s9, %s1637_s11  }
  0x43   : > { %s1455_s16 = scalar_lea.hbm %s2043_s2, 512 }
  0x44   : > { %p1456_p11 = scmp.ne.s32.totalorder %s2043_s2, %s1455_s16  ;;  %p1462_p0 = scmp.lt.u32.totalorder %s1455_s16, %s2043_s2 }
  0x46   : > { %p1458_p12 = pnand %p1456_p11, %p1747_p8 }
  0x48   : > { %p1459_p13 = pneg %p1458_p12 }
  0x4a   : > { %p1464_p2 = pnand %p1462_p0, %p1459_p13 }
  0x4c   : > { %1467 = shalt.err (!%p1464_p2)
}
  0x4d   : > { %s1468_s7 = scalar_lea.vmem %s226_s12, 512  ;;  %p1476_p5 = scmp.lt.s32.totalorder %s226_s12, %s226_s12 }
  0x4e   : > { %p1469_p4 = scmp.ne.s32.totalorder %s226_s12, %s1468_s7  ;;  %p1477_p10 = scmp.lt.s32.totalorder %s1468_s7, %s1468_s7 }
  0x50   : > { %p1471_p7 = pnand %p1469_p4, %p1747_p8  ;;  %p1478_p3 = por %p1477_p10, %p1476_p5 }
  0x52   : > { %p1472_p9 = pneg %p1471_p7 }
  0x54   : > { %p1479_p1 = pnand %p1478_p3, %p1472_p9 }
  0x56   : > { %1482 = shalt.err (!%p1479_p1)
}
  0x57   : > { %1307 = dma.hbm_to_vmem [thread:$0]  (!%p1731_p6), %s2043_s2, 512, %s226_s12, [#allocation8], %s1636_s9, %s1636_s9, %s1637_s11  }
  0x58   : > { %s1638_s13 = smov [#allocation12]   ;;  %s1483_s17 = scalar_lea.hbm %s2045_s4, 512 }
  0x59   : > { %s251_s14 = sshll.u32 %s1638_s13, 4  ;;  %p1484_p1 = scmp.ne.s32.totalorder %s2045_s4, %s1483_s17  ;;  %s252_s14 = int_to_ptr.vmem [resolvable:$true] %s251_s14 }
  0x5a   : > { %p1490_p12 = scmp.lt.u32.totalorder %s1483_s17, %s2045_s4 }
  0x5b   : > { %p1486_p3 = pnand %p1484_p1, %p1747_p8 }
  0x5d   : > { %p1487_p11 = pneg %p1486_p3 }
  0x5f   : > { %p1492_p13 = pnand %p1490_p12, %p1487_p11 }
  0x61   : > { %1495 = shalt.err (!%p1492_p13)
}
  0x62   : > { %s1496_s12 = scalar_lea.vmem %s252_s14, 512  ;;  %p1504_p7 = scmp.lt.s32.totalorder %s252_s14, %s252_s14 }
  0x63   : > { %p1497_p0 = scmp.ne.s32.totalorder %s252_s14, %s1496_s12  ;;  %p1505_p9 = scmp.lt.s32.totalorder %s1496_s12, %s1496_s12 }
  0x65   : > { %p1499_p2 = pnand %p1497_p0, %p1747_p8  ;;  %p1506_p5 = por %p1505_p9, %p1504_p7 }
  0x67   : > { %p1500_p4 = pneg %p1499_p2 }
  0x69   : > { %p1507_p10 = pnand %p1506_p5, %p1500_p4 }
  0x6b   : > { %1510 = shalt.err (!%p1507_p10)
}
  0x6c   : > { %1313 = dma.hbm_to_vmem [thread:$0]  (!%p1731_p6), %s2045_s4, 512, %s252_s14, [#allocation11], %s1636_s9, %s1636_s9, %s1637_s11  }
  0x6d   : > { %s1134_s8 = sadd.s32 4294967294, %s1631_s26   ;;  %s36_s18 = sadd.s32 1, %s1627_s25 }
  0x6e   : > { %p38_p8 = scmp.ge.s32.totalorder %s36_s18, 2  ;;  %s43_s13 = sadd.s32 1, %s1619_s23 }
  0x6f   : > { %p50_p1 = scmp.ne.s32.totalorder %s1619_s23, %s1615_s22  ;;  %p51_p3 = scmp.eq.s32.totalorder %s1631_s26, 0 }
  0x70   : > { %s2077_s18 = smov (%p38_p8, %s36_s18), 0  ;;  %p56_p12 = scmp.ne.s32.totalorder %s1615_s22, %s1611_s21 }
  0x71   : > { %p1848_p11 = por %p51_p3, %p50_p1  ;;  %s40_s9 = ssub.s32 %s1627_s25, %s2077_s18 }
  0x72   : > { %s2060_s11 = sadd.s32 4294967295, %s1631_s26   ;;  %p41_p13 = scmp.eq.s32.totalorder %s40_s9, 0 }
  0x73   : > { %p187_p6 = scmp.eq.s32.totalorder %s2060_s11, 1  ;;  %p2061_p0 = scmp.ne.s32.totalorder %s2054_s28, 0 }
  0x74   : > { %p193_p7 = scmp.eq.s32.totalorder %s1134_s8, 1  ;;  %p1326_p5 = scmp.lt.s32.totalorder %s1631_s26, 2 }
  0x75   : > { %p1860_p2 = por %p2061_p0, %p56_p12  ;;  %p1864_p4 = por %p187_p6, %p50_p1 }
  0x76   : > { %s1869_s17 = scalar_select %p41_p13, %s1619_s23, %s43_s13  }
  0x77   : > { %s2063_s16 = scalar_select %p1864_p4, 1, 0 }
  0x78   : > { %p1871_p9 = por %p193_p7, %p56_p12  ;;  %s268_s20 = sand.u32 1, %s1619_s23  }
  0x79   : > { %s1142_s30 = sshll.u32 %s1627_s25, 7  ;;  %s1141_s7 = sshll.u32 %s268_s20, 3 }
  0x7a   : > { %s2064_s19 = scalar_select %p1871_p9, 1, 0 }
  0x7b   : > { %s1881_s27 = scalar_lea.hbm %s2041_s0, %s1142_s30  ;;  %s272_s8 = scalar_lea.vmem [#allocation4], %s1141_s7 }
  0x7c   : > { %s279_s13 = sshll.u32 %s272_s8, 4  ;;  %p1885_p10 = pnand %p1326_p5, %p1848_p11  ;;  %s1889_s13 = int_to_ptr.vmem [resolvable:$true] %s279_s13 }
  0x7d   : > { %s269_s11 = scalar_lea.sflag [#allocation5], %s268_s20  ;;  %s1511_s1 = scalar_lea.hbm %s1881_s27, 128 }
  0x7e   : > { %p1512_p8 = scmp.ne.s32.totalorder %s1881_s27, %s1511_s1  ;;  %p1513_p1 = pneg %p1885_p10 }
  0x7f   : > { %s1516_s15 = scalar_lea.hbm %s2041_s0, 256  ;;  %p1517_p11 = scmp.lt.u32.totalorder %s1881_s27, %s2041_s0 }
  0x80   : > { %p1514_p3 = pnand %p1513_p1, %p1512_p8  ;;  %p1518_p6 = scmp.lt.u32.totalorder %s1516_s15, %s1511_s1 }
  0x81   : > { %p1520_p0 = scmp.lt.u32.totalorder %s1511_s1, %s1881_s27 }
  0x82   : > { %p1515_p12 = pneg %p1514_p3  ;;  %p1519_p13 = por %p1518_p6, %p1517_p11 }
  0x84   : > { %p1521_p7 = por %p1520_p0, %p1519_p13 }
  0x86   : > { %p1522_p5 = pnand %p1521_p7, %p1515_p12 }
  0x88   : > { %1525 = shalt.err (!%p1522_p5)
}
  0x89   : > { %s1526_s20 = scalar_lea.vmem %s1889_s13, 128  ;;  %s1639_s8 = smov [#allocation4]  }
  0x8a   : > { %p1527_p8 = scmp.ne.s32.totalorder %s1889_s13, %s1526_s20  ;;  %s1531_s30 = sshll.u32 %s1639_s8, 4  ;;  %s1532_s30 = int_to_ptr.vmem [resolvable:$false] %s1531_s30 }
  0x8b   : > { %s1533_s7 = scalar_lea.vmem %s1532_s30, 256  ;;  %p1534_p4 = scmp.lt.s32.totalorder %s1889_s13, %s1532_s30 }
  0x8c   : > { %p1529_p3 = pnand %p1527_p8, %p1513_p1  ;;  %p1535_p11 = scmp.lt.s32.totalorder %s1533_s7, %s1526_s20 }
  0x8e   : > { %p1530_p9 = pneg %p1529_p3  ;;  %p1536_p6 = por %p1535_p11, %p1534_p4 }
  0x90   : > { %p1537_p13 = pnand %p1536_p6, %p1530_p9 }
  0x92   : > { %1540 = shalt.err (!%p1537_p13)
}
  0x93   : > { %1317 = dma.hbm_to_vmem [thread:$0]  (!%p1885_p10), %s1881_s27, 128, %s1889_s13, %s269_s11  }
  0x94   : > { %p2066_p12 = scmp.ne.s32.totalorder %s2055_s29, 0 }
  0x95   : > { %s1919_s1 = sand.u32 (!%p2066_p12), 1, %s1615_s22  }
  0x96   : > { %288 = sbr.rel (%p2066_p12) target bundleno = 1699 (0x6a3), region = 44  ;;  %s1144_s15 = sshll.u32 (!%p2066_p12), %s1919_s1, 3 }
  0x97   : > { %s291_s12 = scalar_lea.sflag (!%p2066_p12), [#allocation5], %s1919_s1  ;;  %s294_s10 = scalar_lea.vmem (!%p2066_p12), [#allocation4], %s1144_s15 }
  0x9d   : > { %1594 = dma.done.wait (%p1860_p2), %s291_s12, 128  }
  0x9e   : > { %1596 = vsyncadd (%p1860_p2), %s291_s12, 4294967168  ;;  %p2067_p4 = scmp.ne.s32.totalorder %s2054_s28, 0 }
  0xa0   : > { %1598 = dma.done.wait (%p2067_p4), [#allocation8], 1024  }
  0xa1   : > { %1600 = vsyncadd (%p2067_p4), [#allocation8], 4294966272 }
  0xa2   : > { %1602 = dma.done.wait (%p2067_p4), [#allocation11], 1024  }
  0xa3   : > { %1604 = vsyncadd (%p2067_p4), [#allocation11], 4294966272  ;;  %v1640_v0 = vmov 0.0|0.0   ;;  %vm1641_vm0 = vmmov 0   ;;  %v1642_v1 = vmov 0.0   ;;  %v344_v2 = vld [vmem:[#allocation9] sm:$0xff] }
  0xa4   : > { %1257 = vmatprep.subr.bf16.mxu0 %v1640_v0  ;;  %1201 = vmatprep.mubr.msk.f32.mxu0 %vm1641_vm0, %v1642_v1  ;;  %v345_v3 = vld [vmem:[#allocation9 + $0x8] sm:$0xff]  ;;  %v346_v4 = vld [vmem:[#allocation9 + $0x10] sm:$0xff]  ;;  %v347_v6 = vld [vmem:[#allocation9 + $0x18] sm:$0xff]  ;;  %vm348_vm1 = vcmask 261120   ;;  %vm581_vm2 = vcmask 130048   ;;  %s1643_s28 = smov 112  }
  0xa5   : > { %1263 = vmatprep.subr.bf16.mxu1 %v1640_v0  ;;  %1212 = vmatprep.mubr.msk.f32.mxu1 %vm1641_vm0, %v1642_v1  ;;  %v1258_v5 = vpack.c.bf16 %v345_v3, %v344_v2  ;;  %v1261_v7 = vpack.c.bf16 %v347_v6, %v346_v4  ;;  %v423_v8 = vld [vmem:[#allocation10] sm:$0xff]  ;;  %v424_v9 = vld [vmem:[#allocation10 + $0x8] sm:$0xff]  ;;  %v343_v13 = vld [vmem:[%s294_s10] sm:$0xff]  ;;  %vm658_vm3 = vcmask 64512   ;;  %s1644_s29 = smov 16   ;;  %s1162_s13 = sshll.u32 %s1623_s24, 7 }
  0xa6   : > { %v501_v10 = vld [vmem:[#allocation7] sm:$0xff]  ;;  %v502_v11 = vld [vmem:[#allocation7 + $0x8] sm:$0xff]  ;;  %v1264_v12 = vpack.c.bf16 %v424_v9, %v423_v8  ;;  %v503_v15 = vld [vmem:[#allocation7 + $0x10] sm:$0xff]  ;;  %s338_s9 = scalar_lea.vmem [#allocation13], %s1144_s15  ;;  %s1991_s30 = scalar_lea.hbm %s2047_s6, %s1162_s13 }
  0xa7   : > { %1259 = vmatpush3.bf16.msra.mxu0 %v1258_v5  ;;  %v1270_v14 = vpack.c.bf16 %v502_v11, %v501_v10  ;;  %v504_v16 = vld [vmem:[#allocation7 + $0x18] sm:$0xff]  ;;  %v425_v18 = vld [vmem:[#allocation10 + $0x10] sm:$0xff]  ;;  %v914_v50 = vld [vmem:[#allocation12] sm:$0xff]  ;;  %s1014_s11 = sshll.u32 %s338_s9, 4  ;;  %s1000_s7 = scalar_lea.sflag [#allocation6], %s1919_s1  ;;  %s1993_s11 = int_to_ptr.vmem [resolvable:$true] %s1014_s11 }
  0xa8   : > { %1260 = vmatprep.subr.bf16.mxu0 %v1640_v0  ;;  %1265 = vmatpush3.bf16.msra.mxu1 %v1264_v12  ;;  %v1273_v17 = vpack.c.bf16 %v504_v16, %v503_v15  ;;  %v426_v19 = vld [vmem:[#allocation10 + $0x18] sm:$0xff]  ;;  %v915_v51 = vld [vmem:[#allocation12 + $0x8] sm:$0xff]  ;;  %v916_v52 = vld [vmem:[#allocation12 + $0x10] sm:$0xff]  ;;  %s1541_s24 = scalar_lea.vmem %s1993_s11, 128  ;;  %p2068_p9 = scmp.ne.s32.totalorder %s2063_s16, 0 }
  0xa9   : > { %1266 = vmatprep.subr.bf16.mxu1 %v1640_v0  ;;  %v1267_v20 = vpack.c.bf16 %v426_v19, %v425_v18  ;;  %v1276_v53 = vpack.c.bf16 %v915_v51, %v914_v50  ;;  %v917_v54 = vld [vmem:[#allocation12 + $0x18] sm:$0xff]  ;;  %v1159_v2 = vld [vmem:[%s2046_s5] ss:$0 sm:$0xff]  ;;  %p1542_p2 = scmp.ne.s32.totalorder %s1993_s11, %s1541_s24  ;;  %s1645_s15 = smov [#allocation13]  }
  0xaa   : > { %v1279_v55 = vpack.c.bf16 %v917_v54, %v916_v52  ;;  %s1545_s12 = sshll.u32 %s1645_s15, 4  ;;  %s1546_s12 = int_to_ptr.vmem [resolvable:$false] %s1545_s12 }
  0xab   : > { %1262 = vmatpush3.bf16.msra.mxu0 %v1261_v7  ;;  %p1543_p10 = pnand %p1542_p2, %p2068_p9  ;;  %s1547_s10 = scalar_lea.vmem %s1546_s12, 256 }
  0xac   : > { %1269 = vmatprep.subr.bf16.mxu0 %v1640_v0  ;;  %1268 = vmatpush3.bf16.msra.mxu1 %v1267_v20  ;;  %p1548_p0 = scmp.lt.s32.totalorder %s1993_s11, %s1546_s12  ;;  %p1549_p7 = scmp.lt.s32.totalorder %s1547_s10, %s1541_s24 }
  0xad   : > { %1226 = vmatprep.subr.mxu1 %v1642_v1  ;;  %p1544_p1 = pneg %p1543_p10 }
  0xae   : > { %1202 = vmatmul.mubr.msk.f32.vlgmr.msra.gmra.mrb[0].mxu0 %vm348_vm1, %v343_v13  ;;  %p1550_p5 = por %p1549_p7, %p1548_p0 }
  0xaf   : > { %1271 = vmatpush3.bf16.msra.mxu0 %v1270_v14  ;;  %1223 = vmatprep.mubr.msk.f32.mxu0 %vm1641_vm0, %v1642_v1 }
  0xb0   : > { %1272 = vmatprep.subr.bf16.mxu0 %v1640_v0  ;;  %1213 = vmatmul.mubr.msk.f32.vlgmr.msra.gmra.mrb[0].mxu1 %vm348_vm1, %v343_v13  ;;  %p1551_p8 = pnand %p1550_p5, %p1544_p1 }
  0xb1   : > { %1228 = vmatprep.mubr.msk.f32.mxu1 %vm1641_vm0, %v1642_v1 }
  0xb3   : > { %1274 = vmatpush3.bf16.msra.mxu0 %v1273_v17 }
  0xb4   : > { %1275 = vmatprep.subr.bf16.mxu0 %v1640_v0 }
  0xb6   : > { %1224 = vmatmul.mubr.msk.f32.vlgmr.msra.gmra.mrb[2].mxu0 %vm348_vm1, %v343_v13 }
  0xb7   : > { %1254 = vmatprep.mubr.msk.f32.mxu0 %vm1641_vm0, %v1642_v1  ;;  %1277 = vmatpush3.bf16.msra.mxu0 %v1276_v53 }
  0xb8   : > { %1278 = vmatprep.subr.bf16.mxu0 %v1640_v0 }
  0xbb   : > { %1280 = vmatpush3.bf16.msra.mxu0 %v1279_v55 }
 0x181   : > { %v418_v21 = vpop.f32.mrb[0].mxu0 }
 0x182   : > { %422 = vst.msk [vmem:[#allocation2] sm:$0xff] %vm348_vm1, %v418_v21  ;;  %v1203_v22 = vpop.f32.mrb[1].mxu0 }
 0x183   : > { %v493_v26 = vpop.f32.mrb[0].mxu1 }
 0x184   : > { %497 = vst.msk [vmem:[#allocation3] sm:$0xff] %vm348_vm1, %v493_v26  ;;  %v1214_v27 = vpop.f32.mrb[1].mxu1 }
 0x189   : > { %v579_v23 = vld [vmem:[#allocation2] sm:$0xff]  ;;  %v575_v24 = vpop.f32.mrb[2].mxu0 }
 0x18a   : > { %1227 = vmatpush3.xpose.msk.msra.mxu1 %vm581_vm2, %v579_v23  ;;  %v1225_v25 = vpop.f32.mrb[3].mxu0  ;;  %743 = vrot.lane.b32.xlu1 %v575_v24, %s1643_s28 }
 0x18b   : > { %1231 = vmatprep.subr.mxu1 %v1642_v1  ;;  %v580_v28 = vld [vmem:[#allocation3] sm:$0xff] }
 0x18d   : > { %1229 = vmatmul.mubr.msk.f32.vlgmr.msra.gmra.mrb[2].mxu1 %vm581_vm2, %v575_v24 }
 0x18e   : > { %1233 = vmatprep.mubr.msk.f32.mxu1 %vm1641_vm0, %v1642_v1  ;;  %1232 = vmatpush3.msra.mxu1 %v580_v28 }
 0x18f   : > { %1236 = vmatprep.subr.mxu1 %v1642_v1 }
 0x1fc   : > { %v744_v37 = vpop.permute.xlu1 %743 }
 0x260   : > { %v654_v29 = vpop.f32.mrb[2].mxu1 }
 0x261   : > { %v1230_v30 = vpop.f32.mrb[3].mxu1  ;;  %v659_v31 = vsel %vm658_vm3, %v654_v29, -inf }
 0x262   : > { %660 = vmax.xlane.f32.xlu0 %v659_v31 }
 0x278   : > { %745 = vrot.lane.b32.xlu0 %v579_v23, %s1643_s28 }
 0x27c   : > { %831 = vrot.lane.b32.xlu0 %v580_v28, %s1643_s28 }
 0x2ef   : > { %v661_v32 = vpop.xlane.xlu0 %660 }
 0x2f0   : > { %v662_v33 = vsub.f32 %v654_v29, %v661_v32 }
 0x2f2   : > { %v663_v34 = vmul.f32 1.442695, %v662_v33 }
 0x2f3   : > { %v746_v35 = vpop.permute.xlu0 %745 }
 0x2f4   : > { %1391 = vpow2.f32 %v663_v34 }
 0x2f7   : > { %v832_v38 = vpop.permute.xlu0 %831 }
 0x2fe   : > { %v1392_v36 = vpop.eup %1391 }
 0x2ff   : > { %1234 = vmatmul.mubr.msk.f32.vlgmr.msra.gmra.mrb[4].mxu1 %vm658_vm3, %v1392_v36  ;;  %v665_v44 = vsel %vm658_vm3, %v1392_v36, 0.0 }
 0x300   : > { %1237 = vmatpush3.xpose.msk.msra.mxu1 %vm581_vm2, %v746_v35  ;;  %1238 = vmatprep.mubr.msk.f32.mxu1 %vm1641_vm0, %v1642_v1 }
 0x301   : > { %1241 = vmatprep.subr.mxu1 %v1642_v1 }
 0x303   : > { %1239 = vmatmul.mubr.msk.f32.vlgmr.msra.gmra.mrb[6].mxu1 %vm581_vm2, %v744_v37 }
 0x304   : > { %1242 = vmatpush3.msra.mxu1 %v832_v38  ;;  %1243 = vmatprep.mubr.msk.f32.mxu1 %vm1641_vm0, %v1642_v1 }
 0x3d2   : > { %v737_v39 = vpop.f32.mrb[4].mxu1 }
 0x3d3   : > { %v1235_v40 = vpop.f32.mrb[5].mxu1 }
 0x3d6   : > { %v817_v41 = vpop.f32.mrb[6].mxu1 }
 0x3d7   : > { %v1240_v42 = vpop.f32.mrb[7].mxu1  ;;  %v821_v43 = vsel %vm658_vm3, %v817_v41, -inf }
 0x3d8   : > { %822 = vmax.xlane.f32.xlu1 %v821_v43 }
 0x3dc   : > { %666 = vadd.xlane.f32.xlu1 %v665_v44 }
 0x465   : > { %v823_v45 = vpop.xlane.xlu1 %822 }
 0x466   : > { %v824_v46 = vsub.f32 %v817_v41, %v823_v45 }
 0x468   : > { %v825_v47 = vmul.f32 1.442695, %v824_v46 }
 0x469   : > { %v667_v61 = vpop.xlane.xlu1 %666 }
 0x46a   : > { %1393 = vpow2.f32 %v825_v47 }
 0x474   : > { %v1394_v48 = vpop.eup %1393 }
 0x475   : > { %1244 = vmatmul.mubr.msk.f32.vlgmr.msra.gmra.mrb[8].mxu1 %vm658_vm3, %v1394_v48  ;;  %v827_v49 = vsel %vm658_vm3, %v1394_v48, 0.0 }
 0x476   : > { %828 = vadd.xlane.f32.xlu0 %v827_v49 }
 0x503   : > { %v829_v56 = vpop.xlane.xlu0 %828 }
 0x504   : > { %1395 = vrcp.f32 %v829_v56 }
 0x505   : > { %1397 = vrcp.f32 %v667_v61 }
 0x50e   : > { %v1396_v57 = vpop.eup %1395 }
 0x50f   : > { %v1398_v62 = vpop.eup %1397 }
 0x510   : > { %v742_v63 = vmul.f32 %v1398_v62, %v737_v39 }
 0x548   : > { %v903_v58 = vpop.f32.mrb[8].mxu1 }
 0x549   : > { %v908_v59 = vmul.f32 %v1396_v57, %v903_v58  ;;  %v1245_v60 = vpop.f32.mrb[9].mxu1 }
 0x54b   : > { %910 = vrot.lane.b32.xlu1 %v908_v59, %s1644_s29 }
 0x5bd   : > { %v911_v1 = vpop.permute.xlu1 %910 }
 0x5be   : > { %v913_v0 = vsel %vm581_vm2, %v742_v63, %v911_v1 }
 0x5bf   : > { %1255 = vmatmul.mubr.msk.f32.vlgmr.msra.gmra.mrb[4].mxu0 %vm348_vm1, %v913_v0 }
 0x692   : > { %v994_v3 = vpop.f32.mrb[4].mxu0 }
 0x693   : > { %v995_v4 = vadd.f32 %v1159_v2, %v994_v3  ;;  %v1256_v5 = vpop.f32.mrb[5].mxu0 }
 0x695   : > { %998 = vst.msk [vmem:[%s338_s9] sm:$0xff] %vm348_vm1, %v995_v4 }
 0x696   : > { %1554 = shalt.err (!%p1551_p8)
}
 0x697   : > { %s1555_s1 = scalar_lea.hbm %s1991_s30, 128  ;;  %s1559_s14 = scalar_lea.hbm %s2047_s6, 256 }
 0x698   : > { %p1556_p3 = scmp.ne.s32.totalorder %s1991_s30, %s1555_s1  ;;  %p1560_p13 = scmp.lt.u32.totalorder %s1991_s30, %s2047_s6 }
 0x699   : > { %p1561_p12 = scmp.lt.u32.totalorder %s1559_s14, %s1555_s1  ;;  %p1563_p2 = scmp.lt.u32.totalorder %s1555_s1, %s1991_s30 }
 0x69a   : > { %p1557_p11 = pnand %p1556_p3, %p2068_p9 }
 0x69b   : > { %p1562_p4 = por %p1561_p12, %p1560_p13 }
 0x69c   : > { %p1558_p6 = pneg %p1557_p11 }
 0x69d   : > { %p1564_p10 = por %p1563_p2, %p1562_p4 }
 0x69f   : > { %p1565_p1 = pnand %p1564_p10, %p1558_p6 }
 0x6a1   : > { %1568 = shalt.err (!%p1565_p1)
}
 0x6a2   : > { %1299 = dma.vmem_to_hbm [thread:$0]  (%p2068_p9), %s1993_s11, 128, %s1991_s30, %s1000_s7  }
 0x6a3 PF: > { %s1026_s9 = sand.u32 1, %s1611_s21   ;;  %p2069_p0 = scmp.ne.s32.totalorder %s2064_s19, 0 }
 0x6a4   : > { %p2070_p7 = scmp.ge.s32.totalorder %s1631_s26, 2  ;;  %s1027_s20 = scalar_lea.sflag [#allocation6], %s1026_s9 }
 0x6a6   : > { %p1319_p5 = pnand %p2070_p7, %p2069_p0 }
 0x6a8   : > { %1606 = dma.done.wait (!%p1319_p5), %s1027_s20, 128  }
 0x6a9   : > { %1608 = vsyncadd (!%p1319_p5), %s1027_s20, 4294967168  ;;  %s24_s26 = sadd.s32 1, %s1631_s26   ;;  %s2071_s21 = smov %s1615_s22 }
 0x6aa   : > { %p21_p8 = scmp.ge.s32.totalorder %s24_s26, 4   ;;  %s2072_s22 = smov %s1619_s23 }
 0x6ab   : > { %s2073_s23 = smov %s1869_s17  ;;  %s2074_s24 = smov %s1627_s25 }
 0x6ac   : > { %s2075_s25 = smov %s2077_s18  ;;  %23 = sbr.rel (!%p21_p8) target bundleno = 10 (0xa), region = 110 }
 0x6b3   :  { %1032 = vsyncpa [#allocation5], 1 }
 0x6b4   :  { %1034 = vsyncpa [#allocation5 + $0x1], 1 }
 0x6b5   :  { %1035 = vsyncpa [#allocation8], 1 }
 0x6b6   :  { %1036 = vsyncpa [#allocation11], 1 }
 0x6b7   :  { %1037 = vsyncpa [#allocation6], 1 }
 0x6b8   :  { %1039 = vsyncpa [#allocation6 + $0x1], 1 }

</bundles_post_ra>
